<compile_context>
chip_gen: v6e
topology: v6e:2x2x1
jax: 0.10.0
libtpu: 0.0.40
codegen_flags: <defaults>
</compile_context>

<pallas_src>
import functools
import numpy as np
import jax
import jax.numpy as jnp
from jax import lax
from jax.experimental import pallas as pl
from jax.experimental.pallas import tpu as pltpu


_BN_EPS = 1e-5
_VMEM_LIMIT = 32 * 1024 * 1024   # safe scoped-VMEM limit on v5e/v6e/v7x


def _round_up(x, m):
    return ((x + m - 1) // m) * m


def _pick_n_tile(n):
    # Large N: big tiles keep the ~0.35us/step overhead negligible and reach
    # the HBM roofline.  Small N: single tile padded to the bf16 sublane
    # granule (16).  Awkward N is padded up and masked out of the BN stats.
    if n <= 1024:
        return _round_up(max(n, 16), 16)
    for t in (1024, 512, 256):
        if n % t == 0:
            return t
    return min((1024, 512, 256), key=lambda t: (_round_up(n, t), -t))


# ---------------------------------------------------------------------------
# Shared in-kernel compute: DeConv (xyz part) + signal offset + disperse + mlp[0]
# ---------------------------------------------------------------------------
def _deconv_disperse_mlp0(xyz, soff_row, wdx, a_mat, e_mat, w0s):
    """xyz: (T,3) f32, soff_row: (1,K6p) f32  ->  pre-BN mlp[0] output (T,C1p) f32."""
    f32 = jnp.float32
    # DeConv: xyz part on the MXU (f32, K=3 is tiny) + broadcast per-batch
    # signal offset (signal @ Wd_sig, computed once in XLA).
    h = jnp.dot(xyz, wdx, preferred_element_type=f32) + soff_row          # (T, K6p)

    # disperse weights: cos = xyz @ axis, clamp, / (||xyz|| + 1e-8), square.
    x = xyz[:, 0:1]
    y = xyz[:, 1:2]
    z = xyz[:, 2:3]
    inv = pl.reciprocal(jnp.sqrt(x * x + y * y + z * z) + 1e-8, approx=True)  # EUP
    cos = jnp.dot(xyz, a_mat, preferred_element_type=f32)                 # (T, 6)
    c = jnp.maximum(cos, 0.0) * inv
    # Broadcast the 6 direction weights across each C0-wide lane group with a
    # tiny MXU dot (E[k, k*C0+d] = 1) instead of lane-misaligned 32-lane slices.
    w = jnp.dot(c * c, e_mat, preferred_element_type=f32)                 # (T, K6p)

    # The disperse-sum is folded into the mlp[0] contraction via the
    # 6x-stacked W0 (K = 6*C0 instead of C0): h1 = (h * w) @ W0_stack.
    hw = (h * w).astype(jnp.bfloat16)
    return jnp.dot(hw, w0s, preferred_element_type=f32)                   # (T, C1p)


def _valid_row_mask(j, t, n_valid):
    """(1,T) f32 mask that zeroes rows past the true N (N-padding)."""
    rowid = lax.broadcasted_iota(jnp.int32, (1, t), 1) + j * t
    return (rowid < n_valid).astype(jnp.float32)


# ---------------------------------------------------------------------------
# Stage 1: per-tile BN1 partial sums (h1 never written to HBM)
# ---------------------------------------------------------------------------
def _stage1_kernel(xyz_ref, soff_ref, wdx_ref, a_ref, e_ref, w0s_ref,
                   stats1_ref, *, n_valid):
    j = pl.program_id(1)
    t = xyz_ref.shape[0]
    h1 = _deconv_disperse_mlp0(xyz_ref[...], soff_ref[0:1, :], wdx_ref[...],
                               a_ref[...], e_ref[...], w0s_ref[...])
    ones = _valid_row_mask(j, t, n_valid)
    stats1_ref[0:1, :] = jnp.dot(ones, h1, preferred_element_type=jnp.float32)
    stats1_ref[1:2, :] = jnp.dot(ones, h1 * h1, preferred_element_type=jnp.float32)


# ---------------------------------------------------------------------------
# Stage 2: recompute h1, BN1+ReLU, mlp[1], center-row overwrite, bf16 h2 +
#          per-tile BN2 partial sums
# ---------------------------------------------------------------------------
def _stage2_kernel(xyz_ref, soff_ref, wdx_ref, a_ref, e_ref, w0s_ref,
                   sc1_ref, sh1_ref, w1_ref, center_ref,
                   h2_ref, stats2_ref, *, n_valid):
    j = pl.program_id(1)
    t = xyz_ref.shape[0]
    f32 = jnp.float32

    h1 = _deconv_disperse_mlp0(xyz_ref[...], soff_ref[0:1, :], wdx_ref[...],
                               a_ref[...], e_ref[...], w0s_ref[...])
    h1 = jnp.maximum(h1 * sc1_ref[...] + sh1_ref[...], 0.0)              # BN1 + ReLU
    h2 = jnp.dot(h1.astype(jnp.bfloat16), w1_ref[...],
                 preferred_element_type=f32)                             # (T, C2p)

    # Overwrite this batch's center row (local row 0 of the j==0 tile) with the
    # center branch BEFORE the BN2 statistics, matching the PyTorch ordering.
    is_center_row = jnp.logical_and(
        lax.broadcasted_iota(jnp.int32, (t, 1), 0) == 0, j == 0)
    h2 = jnp.where(is_center_row, center_ref[0:1, :], h2)

    h2_ref[...] = h2.astype(h2_ref.dtype)                                # bf16 store

    ones = _valid_row_mask(j, t, n_valid)
    stats2_ref[0:1, :] = jnp.dot(ones, h2, preferred_element_type=f32)
    stats2_ref[1:2, :] = jnp.dot(ones, h2 * h2, preferred_element_type=f32)


# ---------------------------------------------------------------------------
# Stage 3: BN2 apply + ReLU (lane-dense output)
# ---------------------------------------------------------------------------
def _stage3_kernel(h2_ref, sc2_ref, sh2_ref, out_ref):
    h2 = h2_ref[...].astype(jnp.float32)
    out_ref[...] = jnp.maximum(h2 * sc2_ref[...] + sh2_ref[...], 0.0)


# ---------------------------------------------------------------------------
# Host-side one-time parameter preparation (numpy)
# ---------------------------------------------------------------------------
def prepare_params(params, in_channel, channels):
    C0, C1, C2 = channels[0], channels[1], channels[-1]
    K6 = 6 * C0
    K6p = _round_up(K6, 128)
    C1p, C2p = _round_up(C1, 128), _round_up(C2, 128)
    Wc, bc, Wd, W0, W1, g0, bt0, g1, bt1 = [np.asarray(p, np.float32) for p in params]

    # center_mlp: torch (C2, in) -> (in, C2p), zero-padded lanes.
    wc = np.zeros((in_channel, C2p), np.float32)
    wc[:, :C2] = Wc.T
    bcp = np.zeros((1, C2p), np.float32)
    bcp[0, :C2] = bc

    # DeConv: torch (6*C0, in) acting on [xyz(3), signal(D)].  Columns permuted
    # from channel-major (torch f = d*6+k) to direction-major (k*C0+d), padded
    # to K6p lanes, then split into the xyz rows (f32, used in-kernel) and the
    # signal rows (bf16, folded into the per-batch XLA offset).
    perm = np.array([d * 6 + k for k in range(6) for d in range(C0)], np.int32)
    wd = np.zeros((in_channel, K6p), np.float32)
    wd[:, :K6] = Wd.T[:, perm]
    wd_xyz = wd[:3]
    wd_sig = wd[3:]

    # axis matrix: cos = xyz @ A, exactly the torch `axis` tensor.
    A = np.array([[0, 0, 1], [0, 0, -1], [0, 1, 0],
                  [0, -1, 0], [1, 0, 0], [-1, 0, 0]], np.float32).T        # (3, 6)

    # E replicates the per-direction cos^2 across each C0-wide lane group.
    E = np.zeros((6, K6p), np.float32)
    for k in range(6):
        E[k, k * C0:(k + 1) * C0] = 1.0

    # mlp[0] stacked 6x: W0_stack[k*C0+d, :] = W0.T[d, :]
    w0s = np.zeros((K6p, C1p), np.float32)
    w0s[:K6, :C1] = np.tile(W0.T, (6, 1))

    w1 = np.zeros((C1p, C2p), np.float32)
    w1[:C1, :C2] = W1.T

    g0p = np.ones((1, C1p), np.float32);  g0p[0, :C1] = g0
    bt0p = np.zeros((1, C1p), np.float32); bt0p[0, :C1] = bt0
    g1p = np.ones((1, C2p), np.float32);  g1p[0, :C2] = g1
    bt1p = np.zeros((1, C2p), np.float32); bt1p[0, :C2] = bt1

    bf16 = jnp.bfloat16
    return dict(
        wc=jnp.asarray(wc, bf16), bc=jnp.asarray(bcp),
        wd_xyz=jnp.asarray(wd_xyz), wd_sig=jnp.asarray(wd_sig, bf16),
        axis_mat=jnp.asarray(A), e_mat=jnp.asarray(E),
        w0s=jnp.asarray(w0s, bf16), w1=jnp.asarray(w1, bf16),
        g0=jnp.asarray(g0p), bt0=jnp.asarray(bt0p),
        g1=jnp.asarray(g1p), bt1=jnp.asarray(bt1p),
        C0=C0, K6p=K6p, C1p=C1p, C2p=C2p,
    )


def _bn_scale_shift(part_stats, gamma, beta, n_rows):
    """Reduce (B, NT, 2, Cp) partial sums -> BN scale/shift rows (1, Cp)."""
    s = part_stats.sum(axis=(0, 1))                       # (2, Cp)
    mean = s[0:1] / n_rows
    # E[x^2] - mean^2 can go slightly negative from f32 cancellation; clamp so
    # rsqrt stays finite.  TODO(synk): Welford-style combine for huge row counts.
    var = jnp.maximum(s[1:2] / n_rows - mean * mean, 0.0)
    scale = gamma * lax.rsqrt(var + _BN_EPS)
    shift = beta - mean * scale
    return scale, shift


# ---------------------------------------------------------------------------
# Forward wrapper
# ---------------------------------------------------------------------------
def geodeconv_forward(xyz, signal, kp, channels):
    """xyz: (B, N, 3), signal: (B, D)  ->  (B, N, channels[-1])"""
    B, N, _ = xyz.shape
    C2 = channels[-1]
    K6p, C1p, C2p = kp["K6p"], kp["C1p"], kp["C2p"]
    rows = float(B * N)

    Tn = _pick_n_tile(N)
    N_pad = _round_up(N, Tn)
    NT = N_pad // Tn

    f32, bf16 = jnp.float32, jnp.bfloat16

    # ---- tiny XLA glue (no (B,N,D) repeated-signal materialization) ----
    center_in = jnp.concatenate([signal, xyz[:, 0, :]], axis=-1).astype(bf16)
    center = jnp.dot(center_in, kp["wc"], preferred_element_type=f32) + kp["bc"]  # (B, C2p)
    center_b = jnp.broadcast_to(center[:, None, :], (B, 8, C2p))

    sig_off = jnp.dot(signal.astype(bf16), kp["wd_sig"],
                      preferred_element_type=f32)                                  # (B, K6p)
    sig_off_b = jnp.broadcast_to(sig_off[:, None, :], (B, 8, K6p))

    xyz_f = xyz.astype(f32)
    if N_pad != N:
        xyz_f = jnp.pad(xyz_f, ((0, 0), (0, N_pad - N), (0, 0)))

    # ---- specs ----
    xyz_spec = pl.BlockSpec((None, Tn, 3), lambda b, j: (b, j, 0))
    soff_spec = pl.BlockSpec((None, 8, K6p), lambda b, j: (b, 0, 0))
    center_spec = pl.BlockSpec((None, 8, C2p), lambda b, j: (b, 0, 0))
    row2_spec = pl.BlockSpec((None, Tn, C2p), lambda b, j: (b, j, 0))

    def const_spec(a):
        return pl.BlockSpec(tuple(a.shape), lambda b, j: (0,) * a.ndim)

    def stats_spec(cp):
        return pl.BlockSpec((None, None, 2, cp), lambda b, j: (b, j, 0, 0))

    cparams = pltpu.CompilerParams(
        dimension_semantics=("parallel", "parallel"),
        vmem_limit_bytes=_VMEM_LIMIT)

    # ---- stage 1: BN1 partial statistics only ----
    stats1 = pl.pallas_call(
        functools.partial(_stage1_kernel, n_valid=N),
        grid=(B, NT),
        in_specs=[xyz_spec, soff_spec, const_spec(kp["wd_xyz"]),
                  const_spec(kp["axis_mat"]), const_spec(kp["e_mat"]),
                  const_spec(kp["w0s"])],
        out_specs=stats_spec(C1p),
        out_shape=jax.ShapeDtypeStruct((B, NT, 2, C1p), f32),
        compiler_params=cparams,
    )(xyz_f, sig_off_b, kp["wd_xyz"], kp["axis_mat"], kp["e_mat"], kp["w0s"])

    scale1, shift1 = _bn_scale_shift(stats1, kp["g0"], kp["bt0"], rows)

    # ---- stage 2: recompute + BN1 + ReLU + mlp[1] + center overwrite ----
    h2, stats2 = pl.pallas_call(
        functools.partial(_stage2_kernel, n_valid=N),
        grid=(B, NT),
        in_specs=[xyz_spec, soff_spec, const_spec(kp["wd_xyz"]),
                  const_spec(kp["axis_mat"]), const_spec(kp["e_mat"]),
                  const_spec(kp["w0s"]),
                  const_spec(scale1), const_spec(shift1),
                  const_spec(kp["w1"]), center_spec],
        out_specs=[row2_spec, stats_spec(C2p)],
        out_shape=[jax.ShapeDtypeStruct((B, N_pad, C2p), bf16),
                   jax.ShapeDtypeStruct((B, NT, 2, C2p), f32)],
        compiler_params=cparams,
    )(xyz_f, sig_off_b, kp["wd_xyz"], kp["axis_mat"], kp["e_mat"], kp["w0s"],
      scale1, shift1, kp["w1"], center_b)

    scale2, shift2 = _bn_scale_shift(stats2, kp["g1"], kp["bt1"], rows)

    # ---- stage 3: BN2 + ReLU ----
    out_pad = pl.pallas_call(
        _stage3_kernel,
        grid=(B, NT),
        in_specs=[row2_spec, const_spec(scale2), const_spec(shift2)],
        out_specs=row2_spec,
        out_shape=jax.ShapeDtypeStruct((B, N_pad, C2p), f32),
        compiler_params=cparams,
    )(h2, scale2, shift2)

    # NOTE: final un-pad slice kept only to honor the (B, N, C2) module
    # interface; downstream consumers that accept the lane-padded layout should
    # take `out_pad` directly and save this extra HBM pass.
    return out_pad[:, :N, :C2]


# ---------------------------------------------------------------------------
# Pure-JAX reference (float32) for validation
# ---------------------------------------------------------------------------
def geodeconv_reference(xyz, signal, params):
    Wc, bc, Wd, W0, W1, g0, bt0, g1, bt1 = params
    B, N, _ = xyz.shape
    D = signal.shape[1]
    center_in = jnp.concatenate([signal, xyz[:, 0, :]], axis=-1)
    center = center_in @ Wc.T + bc
    sig = jnp.broadcast_to(signal[:, None, :], (B, N, D))
    s = jnp.concatenate([xyz, sig], axis=-1).reshape(B * N, D + 3)
    s = (s @ Wd.T).reshape(B, N, -1)
    axis = jnp.array([[0, 0, 1], [0, 0, -1], [0, 1, 0],
                      [0, -1, 0], [1, 0, 0], [-1, 0, 0]], jnp.float32).T
    cos = jnp.maximum(xyz @ axis, 0.0)
    norm = jnp.sqrt(jnp.sum(xyz * xyz, axis=-1, keepdims=True))
    cos = (cos / (norm + 1e-8)) ** 2
    C0 = s.shape[-1] // 6
    s = (s.reshape(B, N, C0, 6) * cos[:, :, None, :]).sum(-1).reshape(B * N, C0)

    def bn(v, g, b):
        m = v.mean(0)
        var = ((v - m) ** 2).mean(0)
        return (v - m) * lax.rsqrt(var + _BN_EPS) * g + b

    h = jax.nn.relu(bn(s @ W0.T, g0, bt0))
    h = h @ W1.T
    h = h.reshape(B, N, -1).at[:, 0, :].set(center).reshape(B * N, -1)
    h = jax.nn.relu(bn(h, g1, bt1))
    return h.reshape(B, N, -1)


def init_params(key, in_channel, channels):
    """Deterministic synthetic parameters matching GeoDeConv.__init__ shapes."""
    C0, C1, C2 = channels[0], channels[1], channels[-1]
    ks = jax.random.split(key, 5)
    Wc = jax.random.normal(ks[0], (C2, in_channel), jnp.float32) * 0.1     # center_mlp.weight
    bc = jax.random.normal(ks[1], (C2,), jnp.float32) * 0.1                # center_mlp.bias
    Wd = jax.random.normal(ks[2], (C0 * 6, in_channel), jnp.float32) * 0.1  # DeConv.weight
    W0 = jax.random.normal(ks[3], (C1, C0), jnp.float32) * 0.1             # mlp[0].weight
    W1 = jax.random.normal(ks[4], (C2, C1), jnp.float32) * 0.1             # mlp[1].weight
    g0, bt0 = jnp.ones((C1,), jnp.float32), jnp.zeros((C1,), jnp.float32)  # BN defaults
    g1, bt1 = jnp.ones((C2,), jnp.float32), jnp.zeros((C2,), jnp.float32)
    return (Wc, bc, Wd, W0, W1, g0, bt0, g1, bt1)


if __name__ == "__main__":
    B, N, D = 2, 16, 32
    channels = [32, 64, 16]        # mlp: 32->64 (BN+ReLU), 64->16 (center overwrite, BN+ReLU)
    in_channel = D + 3

    key = jax.random.PRNGKey(0)
    k_xyz, k_sig, k_par = jax.random.split(key, 3)
    xyz = jax.random.normal(k_xyz, (B, N, 3), jnp.float32)
    signal = jax.random.normal(k_sig, (B, D), jnp.float32)
    params = init_params(k_par, in_channel, channels)
    kparams = prepare_params(params, in_channel, channels)

    out = geodeconv_forward(xyz, signal, kparams, channels)
    out = jax.block_until_ready(out)
    assert out.shape == (B, N, channels[-1])
    assert bool(jnp.all(jnp.isfinite(out)))

    # Loose-tolerance check vs pure-JAX reference (bf16 matmuls + approx
    # reciprocal => not bit-exact).
    ref = geodeconv_reference(xyz, signal, params)
    err = float(jnp.max(jnp.abs(out - ref)))
    assert err < 0.2, f"max abs err vs reference: {err}"
    print("KERNEL_OK")
</pallas_src>

<mosaic_0001>
module attributes {stable_mosaic.version = 11 : i64} {
  func.func @_stage1_kernel(%arg0: i32, %arg1: i32, %arg2: memref<1x16x3xf32, #tpu.memory_space<vmem>>, %arg3: memref<1x8x256xf32, #tpu.memory_space<vmem>>, %arg4: memref<3x256xf32, #tpu.memory_space<vmem>>, %arg5: memref<3x6xf32, #tpu.memory_space<vmem>>, %arg6: memref<6x256xf32, #tpu.memory_space<vmem>>, %arg7: memref<256x128xbf16, #tpu.memory_space<vmem>>, %arg8: memref<1x1x2x128xf32, #tpu.memory_space<vmem>>) attributes {dimension_semantics = [#tpu.dimension_semantics<parallel>, #tpu.dimension_semantics<parallel>], iteration_bounds = array<i64: 2, 1>, scalar_prefetch = 0 : i64, scratch_operands = 0 : i64, tpu.core_type = #tpu.core_type<tc>, window_params = [{transform_indices = @transform_0, window_bounds = array<i64: 1, 16, 3>}, {transform_indices = @transform_1, window_bounds = array<i64: 1, 8, 256>}, {pipeline_mode = #tpu.pipeline_mode<synchronous>, transform_indices = @transform_2, window_bounds = array<i64: 3, 256>}, {pipeline_mode = #tpu.pipeline_mode<synchronous>, transform_indices = @transform_3, window_bounds = array<i64: 3, 6>}, {pipeline_mode = #tpu.pipeline_mode<synchronous>, transform_indices = @transform_4, window_bounds = array<i64: 6, 256>}, {pipeline_mode = #tpu.pipeline_mode<synchronous>, transform_indices = @transform_5, window_bounds = array<i64: 256, 128>}, {transform_indices = @transform_6, window_bounds = array<i64: 1, 1, 2, 128>}]} {
    %c0 = arith.constant 0 : index
    %c0_0 = arith.constant 0 : index
    %c0_1 = arith.constant 0 : index
    %0 = vector.load %arg2[%c0, %c0_0, %c0_1] : memref<1x16x3xf32, #tpu.memory_space<vmem>>, vector<1x16x3xf32>
    %1 = vector.shape_cast %0 : vector<1x16x3xf32> to vector<16x3xf32>
    %c0_2 = arith.constant 0 : index
    %c0_3 = arith.constant 0 : index
    %c0_4 = arith.constant 0 : index
    %2 = vector.load %arg3[%c0_2, %c0_3, %c0_4] : memref<1x8x256xf32, #tpu.memory_space<vmem>>, vector<1x1x256xf32>
    %3 = vector.shape_cast %2 : vector<1x1x256xf32> to vector<1x256xf32>
    %c0_5 = arith.constant 0 : index
    %c0_6 = arith.constant 0 : index
    %4 = vector.load %arg4[%c0_5, %c0_6] : memref<3x256xf32, #tpu.memory_space<vmem>>, vector<3x256xf32>
    %c0_7 = arith.constant 0 : index
    %c0_8 = arith.constant 0 : index
    %5 = vector.load %arg5[%c0_7, %c0_8] : memref<3x6xf32, #tpu.memory_space<vmem>>, vector<3x6xf32>
    %c0_9 = arith.constant 0 : index
    %c0_10 = arith.constant 0 : index
    %6 = vector.load %arg6[%c0_9, %c0_10] : memref<6x256xf32, #tpu.memory_space<vmem>>, vector<6x256xf32>
    %c0_11 = arith.constant 0 : index
    %c0_12 = arith.constant 0 : index
    %7 = vector.load %arg7[%c0_11, %c0_12] : memref<256x128xbf16, #tpu.memory_space<vmem>>, vector<256x128xbf16>
    %cst = arith.constant dense<0.000000e+00> : vector<16x256xf32>
    %8 = tpu.matmul %1, %4, %cst {dimension_numbers = #tpu.dot_dimension_numbers<[1], [0], [0], [1], [0, 0, 1, 1], [], []>} : vector<16x3xf32>, vector<3x256xf32>, vector<16x256xf32> -> vector<16x256xf32>
    %9 = vector.broadcast %3 : vector<1x256xf32> to vector<16x256xf32>
    %10 = arith.addf %8, %9 : vector<16x256xf32>
    %11 = vector.extract_strided_slice %1 {offsets = [0, 0], sizes = [16, 1], strides = [1, 1]} : vector<16x3xf32> to vector<16x1xf32>
    %12 = vector.extract_strided_slice %1 {offsets = [0, 1], sizes = [16, 1], strides = [1, 1]} : vector<16x3xf32> to vector<16x1xf32>
    %13 = vector.extract_strided_slice %1 {offsets = [0, 2], sizes = [16, 1], strides = [1, 1]} : vector<16x3xf32> to vector<16x1xf32>
    %14 = arith.mulf %11, %11 : vector<16x1xf32>
    %15 = arith.mulf %12, %12 : vector<16x1xf32>
    %16 = arith.addf %14, %15 : vector<16x1xf32>
    %17 = arith.mulf %13, %13 : vector<16x1xf32>
    %18 = arith.addf %16, %17 : vector<16x1xf32>
    %19 = math.sqrt %18 : vector<16x1xf32>
    %cst_13 = arith.constant 9.99999993E-9 : f32
    %20 = vector.broadcast %cst_13 : f32 to vector<16x1xf32>
    %21 = arith.addf %19, %20 : vector<16x1xf32>
    %22 = tpu.reciprocal %21 {approx = true} : vector<16x1xf32> -> vector<16x1xf32>
    %cst_14 = arith.constant dense<0.000000e+00> : vector<16x6xf32>
    %23 = tpu.matmul %1, %5, %cst_14 {dimension_numbers = #tpu.dot_dimension_numbers<[1], [0], [0], [1], [0, 0, 1, 1], [], []>} : vector<16x3xf32>, vector<3x6xf32>, vector<16x6xf32> -> vector<16x6xf32>
    %cst_15 = arith.constant 0.000000e+00 : f32
    %24 = vector.broadcast %cst_15 : f32 to vector<16x6xf32>
    %25 = arith.maximumf %23, %24 : vector<16x6xf32>
    %26 = vector.broadcast %22 : vector<16x1xf32> to vector<16x6xf32>
    %27 = arith.mulf %25, %26 : vector<16x6xf32>
    %28 = arith.mulf %27, %27 : vector<16x6xf32>
    %cst_16 = arith.constant dense<0.000000e+00> : vector<16x256xf32>
    %29 = tpu.matmul %28, %6, %cst_16 {dimension_numbers = #tpu.dot_dimension_numbers<[1], [0], [0], [1], [0, 0, 1, 1], [], []>} : vector<16x6xf32>, vector<6x256xf32>, vector<16x256xf32> -> vector<16x256xf32>
    %30 = arith.mulf %10, %29 : vector<16x256xf32>
    %31 = arith.truncf %30 : vector<16x256xf32> to vector<16x256xbf16>
    %cst_17 = arith.constant dense<0.000000e+00> : vector<16x128xf32>
    %32 = tpu.matmul %31, %7, %cst_17 {dimension_numbers = #tpu.dot_dimension_numbers<[1], [0], [0], [1], [0, 0, 1, 1], [], []>} : vector<16x256xbf16>, vector<256x128xbf16>, vector<16x128xf32> -> vector<16x128xf32>
    %33 = tpu.iota {dimensions = array<i32: 1>} : vector<1x16xi32>
    %c16_i32 = arith.constant 16 : i32
    %34 = arith.muli %arg1, %c16_i32 : i32
    %35 = vector.broadcast %34 : i32 to vector<1x16xi32>
    %36 = arith.addi %33, %35 : vector<1x16xi32>
    %c16_i32_18 = arith.constant 16 : i32
    %37 = vector.broadcast %c16_i32_18 : i32 to vector<1x16xi32>
    %38 = arith.cmpi slt, %36, %37 : vector<1x16xi32>
    %39 = arith.extui %38 : vector<1x16xi1> to vector<1x16xi32>
    %40 = arith.sitofp %39 : vector<1x16xi32> to vector<1x16xf32>
    %cst_19 = arith.constant dense<0.000000e+00> : vector<1x128xf32>
    %41 = tpu.matmul %40, %32, %cst_19 {dimension_numbers = #tpu.dot_dimension_numbers<[1], [0], [0], [1], [0, 0, 1, 1], [], []>} : vector<1x16xf32>, vector<16x128xf32>, vector<1x128xf32> -> vector<1x128xf32>
    %c0_20 = arith.constant 0 : index
    %c0_21 = arith.constant 0 : index
    %c0_22 = arith.constant 0 : index
    %c0_23 = arith.constant 0 : index
    %42 = vector.load %arg8[%c0_20, %c0_21, %c0_22, %c0_23] : memref<1x1x2x128xf32, #tpu.memory_space<vmem>>, vector<1x1x1x128xf32>
    %43 = vector.shape_cast %42 : vector<1x1x1x128xf32> to vector<1x128xf32>
    %44 = vector.shape_cast %41 : vector<1x128xf32> to vector<1x1x1x128xf32>
    tpu.vector_store %arg8[%c0_20, %c0_21, %c0_22, %c0_23], %44 {strides = array<i32>} : memref<1x1x2x128xf32, #tpu.memory_space<vmem>>, vector<1x1x1x128xf32>,
    %45 = arith.mulf %32, %32 : vector<16x128xf32>
    %cst_24 = arith.constant dense<0.000000e+00> : vector<1x128xf32>
    %46 = tpu.matmul %40, %45, %cst_24 {dimension_numbers = #tpu.dot_dimension_numbers<[1], [0], [0], [1], [0, 0, 1, 1], [], []>} : vector<1x16xf32>, vector<16x128xf32>, vector<1x128xf32> -> vector<1x128xf32>
    %c0_25 = arith.constant 0 : index
    %c0_26 = arith.constant 0 : index
    %c1 = arith.constant 1 : index
    %c0_27 = arith.constant 0 : index
    %47 = vector.load %arg8[%c0_25, %c0_26, %c1, %c0_27] : memref<1x1x2x128xf32, #tpu.memory_space<vmem>>, vector<1x1x1x128xf32>
    %48 = vector.shape_cast %47 : vector<1x1x1x128xf32> to vector<1x128xf32>
    %49 = vector.shape_cast %46 : vector<1x128xf32> to vector<1x1x1x128xf32>
    tpu.vector_store %arg8[%c0_25, %c0_26, %c1, %c0_27], %49 {strides = array<i32>} : memref<1x1x2x128xf32, #tpu.memory_space<vmem>>, vector<1x1x1x128xf32>,
    return
  }
  func.func @transform_0(%arg0: i32, %arg1: i32) -> (i32, i32, i32) {
    %c0_i32 = arith.constant 0 : i32
    %c0_i32_0 = arith.constant 0 : i32
    return %arg0, %arg1, %c0_i32 : i32, i32, i32
  }
  func.func @transform_1(%arg0: i32, %arg1: i32) -> (i32, i32, i32) {
    %c0_i32 = arith.constant 0 : i32
    %c0_i32_0 = arith.constant 0 : i32
    %c0_i32_1 = arith.constant 0 : i32
    return %arg0, %c0_i32, %c0_i32_0 : i32, i32, i32
  }
  func.func @transform_2(%arg0: i32, %arg1: i32) -> (i32, i32) {
    %c0_i32 = arith.constant 0 : i32
    %c0_i32_0 = arith.constant 0 : i32
    %c0_i32_1 = arith.constant 0 : i32
    return %c0_i32, %c0_i32_0 : i32, i32
  }
  func.func @transform_3(%arg0: i32, %arg1: i32) -> (i32, i32) {
    %c0_i32 = arith.constant 0 : i32
    %c0_i32_0 = arith.constant 0 : i32
    %c0_i32_1 = arith.constant 0 : i32
    return %c0_i32, %c0_i32_0 : i32, i32
  }
  func.func @transform_4(%arg0: i32, %arg1: i32) -> (i32, i32) {
    %c0_i32 = arith.constant 0 : i32
    %c0_i32_0 = arith.constant 0 : i32
    %c0_i32_1 = arith.constant 0 : i32
    return %c0_i32, %c0_i32_0 : i32, i32
  }
  func.func @transform_5(%arg0: i32, %arg1: i32) -> (i32, i32) {
    %c0_i32 = arith.constant 0 : i32
    %c0_i32_0 = arith.constant 0 : i32
    %c0_i32_1 = arith.constant 0 : i32
    return %c0_i32, %c0_i32_0 : i32, i32
  }
  func.func @transform_6(%arg0: i32, %arg1: i32) -> (i32, i32, i32, i32) {
    %c0_i32 = arith.constant 0 : i32
    %c0_i32_0 = arith.constant 0 : i32
    %c0_i32_1 = arith.constant 0 : i32
    return %arg0, %arg1, %c0_i32, %c0_i32_0 : i32, i32, i32, i32
  }
}

</mosaic_0001>

<bundles_post_ra>
// kernel: tpu_custom_call.1
= control target key start
LH: loop header
LB: loop body
LE: loop exit
PB: predicated region body
PF: predicated region fallthrough
CT: control target
= control target key end

     0   :  { %11 = vsyncpa [#allocation3], 0  ;;  %s1765_s0 = inlined_call_operand.vmem [shape: f32[2,16,3], index: 0, kind: input, shape index: {}]   ;;  %s1766_s1 = inlined_call_operand.vmem [shape: f32[2,8,256], index: 1, kind: input, shape index: {}]   ;;  %s1767_s2 = inlined_call_operand.vmem [shape: f32[3,256], index: 2, kind: input, shape index: {}]   ;;  %s1768_s3 = inlined_call_operand.hbm [shape: f32[3,6], index: 3, kind: input, shape index: {}]   ;;  %s1769_s4 = inlined_call_operand.hbm [shape: f32[6,256], index: 4, kind: input, shape index: {}]   ;;  %s1770_s5 = inlined_call_operand.hbm [shape: bf16[256,128], index: 5, kind: input, shape index: {}]   ;;  %s1771_s6 = inlined_call_operand.hbm [shape: f32[2,1,2,128], index: 6, kind: output, shape index: {}]  }
   0x1   :  { %12 = vsyncpa [#allocation6], 0 }
   0x2   :  { %13 = vsyncpa [#allocation4], 0 }
   0x3   :  { %15 = vsyncpa [#allocation4 + $0x1], 0  ;;  %s1568_s21 = smov 0   ;;  %s1570_s22 = smov 0  }
   0x4   :  { %s1572_s23 = smov 0   ;;  %s1574_s24 = smov 0  }
   0x5   :  { %s1576_s25 = smov 0   ;;  %s1578_s26 = smov 0  }
   0x6 LB: > { %s1136_s27 = sadd.s32 4294967295, %s1520_s26   ;;  %s1137_s28 = sadd.s32 4294967294, %s1520_s26   ;;  %s1520_s26 = sphi %s1578_s26, %s21_s26   ;;  %s1516_s25 = sphi %s1576_s25, %s1789_s25   ;;  %s1512_s24 = sphi %s1574_s24, %s1788_s24   ;;  %s1508_s23 = sphi %s1572_s23, %s1787_s23   ;;  %s1504_s22 = sphi %s1570_s22, %s1786_s22   ;;  %s1500_s21 = sphi %s1568_s21, %s1785_s21  }
   0x7   : > { %s33_s29 = sadd.s32 1, %s1516_s25  ;;  %s180_s30 = sadd.s32 1, %s1508_s23 }
   0x8   : > { %p35_p0 = scmp.ge.s32.totalorder %s33_s29, 2  ;;  %p190_p1 = scmp.ne.s32.totalorder %s1508_s23, %s1504_s22 }
   0x9   : > { %p191_p2 = scmp.eq.s32.totalorder %s1136_s27, 1  ;;  %p196_p3 = scmp.ne.s32.totalorder %s1504_s22, %s1500_s21 }
   0xa   : > { %s1791_s29 = smov (%p35_p0, %s33_s29), 0  ;;  %p197_p5 = scmp.eq.s32.totalorder %s1137_s28, 1 }
   0xb   : > { %p1608_p4 = por %p191_p2, %p190_p1  ;;  %s175_s8 = ssub.s32 %s1516_s25, %s1791_s29 }
   0xc   : > { %p1138_p6 = scmp.ge.s32.totalorder %s1520_s26, 1  ;;  %p178_p7 = scmp.eq.s32.totalorder %s175_s8, 0 }
   0xd   : > { %s1776_s7 = scalar_select %p1608_p4, 1, 0 }
   0xe   : > { %p1615_p8 = por %p197_p5, %p196_p3  ;;  %p204_p9 = scmp.lt.s32.totalorder %s1520_s26, 3 }
   0xf   : > { %s1621_s10 = scalar_select %p178_p7, %s1508_s23, %s180_s30  }
  0x10   : > { %s1777_s9 = scalar_select %p1615_p8, 1, 0 }
  0x11   : > { %p1623_p10 = pnand %p1138_p6, %p204_p9  ;;  %p1627_p11 = scmp.eq.s32.totalorder %s1136_s27, 0 }
  0x12   : > { %s1522_s13 = smov [#allocation5]   ;;  %s1523_s16 = smov [#allocation2]  }
  0x13   : > { %s1778_s11 = scalar_select %p1623_p10, 1, 0 }
  0x14   : > { %s1779_s12 = scalar_select %p1627_p11, 1, 0 }
  0x15   : > { %p1252_p12 = pneg %p1623_p10  ;;  %s231_s14 = sshll.u32 %s1522_s13, 4  ;;  %s232_s14 = int_to_ptr.vmem [resolvable:$true] %s231_s14 }
  0x16   : > { %s220_s17 = sshll.u32 %s1523_s16, 4  ;;  %s1369_s18 = scalar_lea.vmem %s232_s14, 256  ;;  %s221_s17 = int_to_ptr.vmem [resolvable:$true] %s220_s17 }
  0x17   : > { %p1635_p13 = pnand %p1627_p11, %p1252_p12  ;;  %p1370_p1 = scmp.ne.s32.totalorder %s232_s14, %s1369_s18 }
  0x18   : > { %p1377_p5 = scmp.lt.s32.totalorder %s232_s14, %s232_s14  ;;  %p1378_p6 = scmp.lt.s32.totalorder %s1369_s18, %s1369_s18 }
  0x19   : > { %p1360_p0 = pneg %p1635_p13 }
  0x1a   : > { %p1379_p7 = por %p1378_p6, %p1377_p5 }
  0x1b   : > { %p1372_p2 = pnand %p1370_p1, %p1360_p0 }
  0x1d   : > { %p1373_p3 = pneg %p1372_p2 }
  0x1f   : > { %p1380_p9 = pnand %p1379_p7, %p1373_p3 }
  0x21   : > { %1383 = shalt.err (!%p1380_p9)
}
  0x22   : > { %1258 = dma.hbm_to_vmem [thread:$0]  (!%p1635_p13), %s1769_s4, 256, %s232_s14, [#allocation6]  }
  0x23   : > { %s1395_s27 = scalar_lea.vmem %s221_s17, 64  ;;  %p1403_p1 = scmp.lt.s32.totalorder %s221_s17, %s221_s17 }
  0x24   : > { %p1396_p12 = scmp.ne.s32.totalorder %s221_s17, %s1395_s27  ;;  %p1404_p2 = scmp.lt.s32.totalorder %s1395_s27, %s1395_s27 }
  0x26   : > { %p1398_p8 = pnand %p1396_p12, %p1360_p0  ;;  %p1405_p11 = por %p1404_p2, %p1403_p1 }
  0x28   : > { %p1399_p4 = pneg %p1398_p8 }
  0x2a   : > { %p1406_p10 = pnand %p1405_p11, %p1399_p4 }
  0x2c   : > { %1409 = shalt.err (!%p1406_p10)
}
  0x2d   : > { %1255 = dma.hbm_to_vmem [thread:$0]  (!%p1635_p13), %s1768_s3, 64, %s221_s17, [#allocation3]  }
  0x2e   : > { %s1524_s8 = smov [#allocation7]  }
  0x2f   : > { %s241_s13 = sshll.u32 %s1524_s8, 4  ;;  %s242_s13 = int_to_ptr.vmem [resolvable:$true] %s241_s13 }
  0x30   : > { %s1421_s14 = scalar_lea.vmem %s242_s13, 2048  ;;  %p1429_p6 = scmp.lt.s32.totalorder %s242_s13, %s242_s13 }
  0x31   : > { %p1422_p3 = scmp.ne.s32.totalorder %s242_s13, %s1421_s14  ;;  %p1430_p7 = scmp.lt.s32.totalorder %s1421_s14, %s1421_s14 }
  0x33   : > { %p1424_p8 = pnand %p1422_p3, %p1360_p0  ;;  %p1431_p4 = por %p1430_p7, %p1429_p6 }
  0x35   : > { %p1425_p5 = pneg %p1424_p8 }
  0x37   : > { %p1432_p10 = pnand %p1431_p4, %p1425_p5 }
  0x39   : > { %1435 = shalt.err (!%p1432_p10)
}
  0x3a   : > { %s1525_s16 = smov 64   ;;  %s1526_s18 = smov 4  }
  0x3b   : > { %1261 = dma.hbm_to_vmem [thread:$0]  (!%p1635_p13), %s1770_s5, 2048, %s242_s13, [#allocation6], %s1525_s16, %s1525_s16, %s1526_s18  }
  0x3c   : > { %p1781_p11 = scmp.ne.s32.totalorder %s1778_s11, 0 }
  0x3d   : > { %p1782_p9 = scmp.ne.s32.totalorder (!%p1781_p11), %s1779_s12, 0 }
  0x3e   : > { %278 = sbr.rel (%p1781_p11) target bundleno = 982 (0x3d6), region = 44 }
  0x43   : > { %1487 = dma.done.wait (%p1782_p9), [#allocation3], 64  }
  0x44   : > { %1489 = vsyncadd (%p1782_p9), [#allocation3], 4294967232 }
  0x45   : > { %1491 = dma.done.wait (%p1782_p9), [#allocation6], 2304  }
  0x46   : > { %1493 = vsyncadd (%p1782_p9), [#allocation6], 4294964992  ;;  %p326_p0 = scmp.lt.s32.totalorder %s1512_s24, 1  ;;  %v1527_v0 = vmov 0.0   ;;  %vm400_vm0 = vcmask 1042432   ;;  %vm393_vm1 = vcmask 23552   ;;  %v381_v43 = vlaneseq }
  0x47   : > { %469 = vmatprep.mubr.f32.mxu1 %v1527_v0  ;;  %v344_v3 = vld [vmem:[%s1767_s2] sm:$0x77]  ;;  %s1528_s8 = smov 127   ;;  %s1529_s13 = smov 126   ;;  %v1530_v8 = vmov 0   ;;  %vm621_vm6 = vcmask 1045504  }
  0x48   : > { %s1678_s11 = scalar_select %p326_p0, %s1512_s24, 1  ;;  %v392_v6 = vcombine.high %v344_v3, %v344_v3  ;;  %v345_v7 = vld [vmem:[#allocation2] sm:$0x7]  ;;  %1332 = vset.pattern.permute.xlu1 %v1530_v8  ;;  %1331 = vset.pattern.permute.xlu0 %v1530_v8  ;;  %v347_v29 = vld [vmem:[#allocation5 + $0x8] sm:$0x3f]  ;;  %v1336_v35 = vld [vmem:[#allocation7 + $0x70] sm:$0xff]  }
  0x49   : > { %v346_v31 = vld [vmem:[#allocation5] sm:$0x3f]  ;;  %v1334_v33 = vld [vmem:[#allocation7 + $0x78] sm:$0xff]   ;;  %v1338_v37 = vld [vmem:[#allocation7 + $0x68] sm:$0xff]   ;;  %v382_v44 = vshrl.u32 %v381_v43, 7  ;;  %vm614_vm7 = vcmask 48128  }
  0x4a   : > { %s1186_s15 = sshll.u32 %s1678_s11, 4  ;;  %1152 = vmatprep.subr.msk.mxu1 %vm400_vm0, %v392_v6  ;;  %v1335_v34 = vld [vmem:[#allocation7 + $0x38] sm:$0xff]   ;;  %1191 = vmatprep.subr.bf16.mxu0 %v1334_v33  ;;  %v1337_v36 = vld [vmem:[#allocation7 + $0x30] sm:$0xff]   ;;  %v1339_v38 = vld [vmem:[#allocation7 + $0x28] sm:$0xff]   ;;  %vm1531_vm8 = vmmov 0   ;;  %vm856_vm10 = vcmask 130048  }
  0x4b   : > { %s333_s28 = scalar_lea.vmem %s1765_s0, %s1186_s15  ;;  %1153 = vmatpush1.msk.msra.mxu1 %vm400_vm0, %v344_v3  ;;  %1192 = vmatpush3.bf16.msra.mxu0 %v1335_v34  ;;  %v1340_v39 = vld [vmem:[#allocation7 + $0x60] sm:$0xff]   ;;  %v1342_v41 = vld [vmem:[#allocation7 + $0x58] sm:$0xff]   ;;  %s339_s18 = scalar_lea.vmem %s1766_s1, %s1186_s15  ;;  %v383_v45 = vsub.s32 0, %v382_v44  ;;  %v387_v47 = vsub.s32 1, %v382_v44  ;;  %v1345_v6 = vld [vmem:[#allocation7 + $0x10] sm:$0xff]  }
  0x4c   : > { %v342_v1 = vld [vmem:[%s333_s28 + $0x8] sm:$0xff]  ;;  %v341_v2 = vld [vmem:[%s333_s28] sm:$0xff]  ;;  %1219 = vmatprep.subr.msk.mxu1 %vm400_vm0, %v345_v7  ;;  %1193 = vmatprep.subr.bf16.mxu0 %v1336_v35  ;;  %v1341_v40 = vld [vmem:[#allocation7 + $0x20] sm:$0xff]   ;;  %s322_s19 = sand.u32 1, %s1504_s22   ;;  %s1183_s20 = sshll.u32 %s1512_s24, 5 }
  0x4d   : > { %v483_v4 = vmul.f32 %v342_v1, %v342_v1  ;;  %v482_v5 = vmul.f32 %v341_v2, %v341_v2  ;;  %1154 = vmatmul.mubr.msk.f32.vlgmr.msra.gmra.mxu1 %vm393_vm1, %v341_v2  ;;  %v1343_v42 = vld [vmem:[#allocation7 + $0x18] sm:$0xff]   ;;  %v343_v46 = vld [vmem:[%s339_s18] ss:$8 sm:$0x3]  ;;  %s1147_s17 = sshll.u32 %s322_s19, 1  ;;  %s1721_s12 = scalar_lea.hbm %s1771_s6, %s1183_s20 }
  0x4e   : > { %475 = vmatprep.mubr.f32.mxu1 %v1527_v0  ;;  %1220 = vmatpush3.msk.msra.mxu1 %vm400_vm0, %v345_v7  ;;  %v384_v48 = vrot.slane %v343_v46, %v383_v45  ;;  %v388_v49 = vrot.slane %v343_v46, %v387_v47  ;;  %v1346_v7 = vld [vmem:[#allocation7 + $0x48] sm:$0xff]   ;;  %s324_s11 = scalar_lea.vmem [#allocation8], %s1147_s17  ;;  %s1005_s30 = scalar_lea.sflag [#allocation4], %s322_s19 }
  0x4f   : > { %488 = vrot.lane.b32.xlu1 %v483_v4, %s1528_s8  ;;  %486 = vrot.lane.b32.xlu0 %v482_v5, %s1528_s8  ;;  %v1347_v8 = vld [vmem:[#allocation7 + $0x8] sm:$0xff]   ;;  %s1019_s15 = sshll.u32 %s324_s11, 4  ;;  %p1783_p12 = scmp.ne.s32.totalorder %s1776_s7, 0  ;;  %s1716_s15 = int_to_ptr.vmem [resolvable:$true] %s1019_s15 }
  0x50   : > { %1159 = vmatprep.subr.msk.mxu1 %vm621_vm6, %v347_v29  ;;  %1194 = vmatpush3.bf16.msra.mxu0 %v1337_v36  ;;  %s1436_s8 = scalar_lea.vmem %s1716_s15, 32  ;;  %s1532_s24 = smov [#allocation8]  }
  0x51   : > { %1155 = vmatmul.mubr.msk.f32.gmra.mxu1 %vm393_vm1, %v342_v1  ;;  %1195 = vmatprep.subr.bf16.mxu0 %v1338_v37  ;;  %p1437_p13 = scmp.ne.s32.totalorder %s1716_s15, %s1436_s8 }
  0x52   : > { %1221 = vmatprep.mubr.msk.f32.mxu1 %vm393_vm1, %v341_v2 }
  0x53   : > { %496 = vrot.lane.b32.xlu1 %v483_v4, %s1529_s13  ;;  %494 = vrot.lane.b32.xlu0 %v482_v5, %s1529_s13  ;;  %p1438_p1 = pnand %p1437_p13, %p1783_p12  ;;  %s1440_s13 = sshll.u32 %s1532_s24, 4  ;;  %s1441_s13 = int_to_ptr.vmem [resolvable:$false] %s1440_s13 }
  0x54   : > { %1196 = vmatpush3.bf16.msra.mxu0 %v1339_v38  ;;  %s1442_s14 = scalar_lea.vmem %s1441_s13, 64  ;;  %p1443_p3 = scmp.lt.s32.totalorder %s1716_s15, %s1441_s13 }
  0x55   : > { %1222 = vmatmul.mubr.msk.f32.vlgmr.msra.gmra.mxu1 %vm393_vm1, %v342_v1  ;;  %1197 = vmatprep.subr.bf16.mxu0 %v1340_v39  ;;  %p1439_p2 = pneg %p1438_p1  ;;  %p1444_p8 = scmp.lt.s32.totalorder %s1442_s14, %s1436_s8 }
  0x56   : > { %692 = vmatprep.mubr.f32.mxu1 %v1527_v0  ;;  %1160 = vmatpush1.msk.msra.mxu1 %vm621_vm6, %v346_v31 }
  0x57   : > { %1224 = vmatprep.subr.mxu1 %v1527_v0  ;;  %p1445_p5 = por %p1444_p8, %p1443_p3 }
  0x58   : > { %1198 = vmatpush3.bf16.msra.mxu0 %v1341_v40 }
  0x59   : > { %1199 = vmatprep.subr.bf16.mxu0 %v1342_v41  ;;  %p1446_p6 = pnand %p1445_p5, %p1439_p2 }
  0x5c   : > { %1200 = vmatpush3.bf16.msra.mxu0 %v1343_v42 }
  0xc1   : > { %v489_v9 = vpop.permute.xlu1 %488  ;;  %v487_v10 = vpop.permute.xlu0 %486 }
  0xc2   : > { %v493_v11 = vadd.f32 %v489_v9, %v483_v4  ;;  %v492_v12 = vadd.f32 %v487_v10, %v482_v5  ;;  %v1344_v5 = vld [vmem:[#allocation7 + $0x50] sm:$0xff]   ;;  %v1348_v9 = vld [vmem:[#allocation7 + $0x40] sm:$0xff]  }
  0xc3   : > { %1201 = vmatprep.subr.bf16.mxu0 %v1344_v5  ;;  %v1349_v10 = vld [vmem:[#allocation7] sm:$0xff]  }
  0xc4   : > { %1202 = vmatpush3.bf16.msra.mxu0 %v1345_v6 }
  0xc5   : > { %v497_v13 = vpop.permute.xlu1 %496  ;;  %v495_v14 = vpop.permute.xlu0 %494  ;;  %1203 = vmatprep.subr.bf16.mxu0 %v1346_v7 }
  0xc6   : > { %v501_v15 = vadd.f32 %v497_v13, %v493_v11  ;;  %v500_v16 = vadd.f32 %v495_v14, %v492_v12 }
  0xc8   : > { %1350 = vrsqrt.f32 %v501_v15  ;;  %vm511_vm2 = vcmp.eq.f32.partialorder %v501_v15, inf  ;;  %v514_v20 = vand.u32 2147483648, %v501_v15  ;;  %vm513_vm3 = vcmp.eq.f32.partialorder %v501_v15, 0.0  ;;  %1204 = vmatpush3.bf16.msra.mxu0 %v1347_v8 }
  0xc9   : > { %1352 = vrsqrt.f32 %v500_v16  ;;  %vm504_vm4 = vcmp.eq.f32.partialorder %v500_v16, inf  ;;  %v507_v23 = vand.u32 2147483648, %v500_v16  ;;  %vm506_vm5 = vcmp.eq.f32.partialorder %v500_v16, 0.0  ;;  %1205 = vmatprep.subr.bf16.mxu0 %v1348_v9 }
  0xcc   : > { %1206 = vmatpush3.bf16.msra.mxu0 %v1349_v10 }
  0xd5   : > { %v1351_v17 = vpop.eup %1350 }
  0xd6   : > { %v1353_v18 = vpop.eup %1352  ;;  %v510_v19 = vmul.f32 %v1351_v17, %v501_v15 }
  0xd7   : > { %v503_v21 = vmul.f32 %v1353_v18, %v500_v16 }
  0xd8   : > { %v512_v22 = vsel %vm511_vm2, %v501_v15, %v510_v19 }
  0xd9   : > { %v515_v24 = vsel %vm513_vm3, %v514_v20, %v512_v22  ;;  %v505_v25 = vsel %vm504_vm4, %v500_v16, %v503_v21 }
  0xda   : > { %v517_v26 = vadd.f32 1e-08, %v515_v24  ;;  %v508_v27 = vsel %vm506_vm5, %v507_v23, %v505_v25  ;;  %v849_v23 = vand.u32 127, %v381_v43 }
  0xdb   : > { %v516_v28 = vadd.f32 1e-08, %v508_v27 }
  0xdc   : > { %1354 = vrcp.f32 %v517_v26  ;;  %vm853_vm9 = vcmp.lt.s32.totalorder %v849_v23, 16 }
  0xdd   : > { %1356 = vrcp.f32 %v516_v28  ;;  %v1179_v28 = vsel %vm853_vm9, 1.0, %v1527_v0 }
  0xe9   : > { %v1355_v30 = vpop.eup %1354 }
  0xea   : > { %v1357_v32 = vpop.eup %1356  ;;  %607 = vperm.xlu1 %1332, %v1355_v30  }
  0xeb   : > { %602 = vperm.xlu0 %1331, %v1357_v32  }
 0x10d   : > { %v471_v50 = vpop.f32.mrf.mxu1 }
 0x10e   : > { %v472_v51 = vadd.f32 %v471_v50, %v384_v48 }
 0x10f   : > { %v473_v52 = vpop.f32.mrf.mxu1 }
 0x110   : > { %v474_v53 = vadd.f32 %v473_v52, %v388_v49 }
 0x111   : > { %v477_v54 = vpop.f32.mrf.mxu1 }
 0x112   : > { %v478_v55 = vadd.f32 %v477_v54, %v384_v48 }
 0x113   : > { %v479_v56 = vpop.f32.mrf.mxu1 }
 0x114   : > { %v480_v57 = vadd.f32 %v479_v56, %v388_v49 }
 0x115   : > { %v1223_v58 = vpop.f32.mrf.mxu1 }
 0x116   : > { %v599_v63 = vmax.f32 %v1223_v58, 0.0 }
 0x117   : > { %v589_v59 = vpop.f32.mrf.mxu1 }
 0x118   : > { %v598_v60 = vmax.f32 %v589_v59, 0.0 }
 0x165   : > { %v608_v61 = vpop.permute.xlu1 %607 }
 0x166   : > { %v603_v62 = vpop.permute.xlu0 %602  ;;  %v611_v2 = vmul.f32 %v608_v61, %v599_v63 }
 0x167   : > { %v610_v1 = vmul.f32 %v603_v62, %v598_v60 }
 0x168   : > { %v613_v4 = vmul.f32 %v611_v2, %v611_v2 }
 0x169   : > { %v612_v3 = vmul.f32 %v610_v1, %v610_v1 }
 0x16b   : > { %1161 = vmatmul.mubr.msk.f32.vlgmr.msra.gmra.mxu1 %vm614_vm7, %v612_v3 }
 0x16c   : > { %698 = vmatprep.mubr.f32.mxu1 %v1527_v0 }
 0x16f   : > { %1162 = vmatmul.mubr.msk.f32.gmra.mxu1 %vm614_vm7, %v613_v4 }
 0x170   : > { %1228 = vmatprep.mubr.msk.f32.mxu1 %vm1531_vm8, %v1527_v0 }
 0x22b   : > { %v694_v11 = vpop.f32.mrf.mxu1 }
 0x22c   : > { %v705_v14 = vmul.f32 %v694_v11, %v472_v51 }
 0x22d   : > { %v696_v12 = vpop.f32.mrf.mxu1 }
 0x22e   : > { %v706_v17 = vmul.f32 %v696_v12, %v474_v53 }
 0x22f   : > { %v700_v13 = vpop.f32.mrf.mxu1 }
 0x230   : > { %v707_v15 = vmul.f32 %v700_v13, %v478_v55 }
 0x231   : > { %v702_v16 = vpop.f32.mrf.mxu1 }
 0x232   : > { %v709_v18 = vpack.c.bf16 %v707_v15, %v705_v14  ;;  %v708_v19 = vmul.f32 %v702_v16, %v480_v57 }
 0x234   : > { %v710_v20 = vpack.c.bf16 %v708_v19, %v706_v17 }
 0x236   : > { %839 = vmatprep.mubr.bf16.mxu0 %v710_v20 }
 0x237   : > { %840 = vmatmul.mubr.bf16.vlgmr.msra.gmra.mxu0 %v709_v18 }
 0x2f7   : > { %v1207_v21 = vpop.f32.mrf.mxu0 }
 0x2f9   : > { %v1208_v22 = vpop.f32.mrf.mxu0 }
 0x2fa   : > { %v1209_v27 = vadd.f32 %v1208_v22, %v1207_v21 }
 0x2fb   : > { %v1210_v24 = vpop.f32.mrf.mxu0 }
 0x2fc   : > { %v931_v30 = vmul.f32 %v1209_v27, %v1209_v27 }
 0x2fd   : > { %v1211_v25 = vpop.f32.mrf.mxu0 }
 0x2fe   : > { %v1212_v26 = vadd.f32 %v1211_v25, %v1210_v24 }
 0x300   : > { %1225 = vmatpush3.msra.mxu1 %v1212_v26  ;;  %v932_v29 = vmul.f32 %v1212_v26, %v1212_v26 }
 0x301   : > { %1226 = vmatprep.subr.mxu1 %v1527_v0 }
 0x302   : > { %1227 = vmatpush3.msra.mxu1 %v1209_v27 }
 0x303   : > { %1231 = vmatprep.subr.mxu1 %v1527_v0  ;;  %1229 = vmatmul.mubr.msk.f32.vlgmr.msra.gmra.mxu1 %vm856_vm10, %v1179_v28 }
 0x304   : > { %1232 = vmatpush3.msra.mxu1 %v932_v29  ;;  %1235 = vmatprep.mubr.msk.f32.mxu1 %vm1531_vm8, %v1527_v0 }
 0x305   : > { %1233 = vmatprep.subr.mxu1 %v1527_v0 }
 0x306   : > { %1234 = vmatpush3.msra.mxu1 %v931_v30 }
 0x307   : > { %1236 = vmatmul.mubr.msk.f32.vlgmr.msra.gmra.mxu1 %vm856_vm10, %v1179_v28 }
 0x3c3   : > { %v926_v31 = vpop.f32.mrf.mxu1 }
 0x3c4   : > { %930 = vst [vmem:[%s324_s11] sm:$0x1] %v926_v31 }
 0x3c5   : > { %v1230_v32 = vpop.f32.mrf.mxu1 }
 0x3c7   : > { %v999_v0 = vpop.f32.mrf.mxu1 }
 0x3c8   : > { %1003 = vst [vmem:[%s324_s11 + $0x1] sm:$0x1] %v999_v0 }
 0x3c9   : > { %v1237_v33 = vpop.f32.mrf.mxu1 }
 0x3ca   : > { %1449 = shalt.err (!%p1446_p6)
}
 0x3cb   : > { %s1450_s16 = scalar_lea.hbm %s1721_s12, 32  ;;  %s1454_s17 = scalar_lea.hbm %s1771_s6, 64 }
 0x3cc   : > { %p1451_p7 = scmp.ne.s32.totalorder %s1721_s12, %s1450_s16  ;;  %p1455_p11 = scmp.lt.s32.totalorder %s1721_s12, %s1771_s6 }
 0x3cd   : > { %p1456_p9 = scmp.lt.s32.totalorder %s1454_s17, %s1450_s16 }
 0x3ce   : > { %p1452_p4 = pnand %p1451_p7, %p1783_p12 }
 0x3cf   : > { %p1457_p0 = por %p1456_p9, %p1455_p11 }
 0x3d0   : > { %p1453_p10 = pneg %p1452_p4 }
 0x3d2   : > { %p1458_p13 = pnand %p1457_p0, %p1453_p10 }
 0x3d4   : > { %1461 = shalt.err (!%p1458_p13)
}
 0x3d5   : > { %1250 = dma.vmem_to_hbm [thread:$0]  (%p1783_p12), %s1716_s15, 32, %s1721_s12, %s1005_s30  }
 0x3d6 PF: > { %p1272_p1 = scmp.ge.s32.totalorder %s1520_s26, 2  ;;  %s1031_s27 = sand.u32 1, %s1500_s21  }
 0x3d7   : > { %p1784_p2 = scmp.ne.s32.totalorder %s1777_s9, 0  ;;  %s1032_s28 = scalar_lea.sflag [#allocation4], %s1031_s27 }
 0x3d9   : > { %p1263_p3 = pnand %p1272_p1, %p1784_p2 }
 0x3db   : > { %p1264_p8 = pneg %p1263_p3 }
 0x3dd   : > { %1495 = dma.done.wait (%p1264_p8), %s1032_s28, 32  }
 0x3de   : > { %1497 = vsyncadd (%p1264_p8), %s1032_s28, 4294967264  ;;  %s21_s26 = sadd.s32 1, %s1520_s26   ;;  %s1785_s21 = smov %s1504_s22 }
 0x3df   : > { %p18_p5 = scmp.ge.s32.totalorder %s21_s26, 4   ;;  %s1786_s22 = smov %s1508_s23 }
 0x3e0   : > { %s1787_s23 = smov %s1621_s10  ;;  %s1788_s24 = smov %s1516_s25 }
 0x3e1   : > { %s1789_s25 = smov %s1791_s29  ;;  %20 = sbr.rel (!%p18_p5) target bundleno = 6 (0x6), region = 95 }
 0x3e6   :  { %1037 = vsyncpa [#allocation3], 1 }
 0x3e7   :  { %1039 = vsyncpa [#allocation3 + $0x1], 1 }
 0x3e8   :  { %1040 = vsyncpa [#allocation6], 1 }
 0x3e9   :  { %1041 = vsyncpa [#allocation4], 1 }
 0x3ea   :  { %1043 = vsyncpa [#allocation4 + $0x1], 1 }

</bundles_post_ra>
